<compile_context>
chip_gen: v6e
topology: v6e:2x2x1
jax: 0.10.0
libtpu: 0.0.40
codegen_flags: <defaults>
</compile_context>

<pallas_src>
import math

import jax
import jax.numpy as jnp
import numpy as np
from jax.experimental import pallas as pl
from jax.experimental.pallas import tpu as pltpu


def esn_kernel(x_ref, sw_ref, win_t_ref, wout_t_ref, b_ref, o_ref):
    # x_ref:      (TM, I)  f32  -- TM flattened (time, batch) rows; cast to bf16
    #                             here (cheaper than a wrapper cast pass on HBM)
    # sw_ref:     (TM, R)  f32  -- precomputed state @ W.T, tiled so row m maps
    #                             to batch m % B (grid-invariant block)
    # win_t_ref:  (I, R)   bf16 -- Win pre-transposed (grid-invariant)
    # wout_t_ref: (R, O)   bf16 -- Wout weight pre-transposed (grid-invariant)
    # b_ref:      (1, O)   f32  -- Wout bias (grid-invariant)
    # o_ref:      (TM, O)  f32
    x = x_ref[...].astype(jnp.bfloat16)
    pre = jnp.dot(x, win_t_ref[...], preferred_element_type=jnp.float32)
    h = jnp.tanh(pre + sw_ref[...])                       # f32 epilogue (v5e-safe)
    y = jnp.tanh(
        jnp.dot(h.astype(jnp.bfloat16), wout_t_ref[...],
                preferred_element_type=jnp.float32)
        + b_ref[...]
    )
    o_ref[...] = y.astype(o_ref.dtype)


@jax.jit
def esn_forward(x, Win, W, Wout_w, Wout_b, initial_state=None):
    T, B, I = x.shape
    R = Win.shape[0]
    O = Wout_w.shape[0]

    if initial_state is None:
        state = jnp.zeros((B, R), dtype=jnp.float32)
    else:
        state = initial_state

    # Hoisted constant: state @ W.T (B, R), computed once by XLA in f32.
    sw = jnp.matmul(state, W.T)

    # Flatten (T, B) -> M.  Both reshapes (in and out) are free row-major
    # bitcasts, so no extra HBM passes.
    M = T * B
    x2 = x.reshape(M, I)                                   # (M, I), f32 in HBM

    # Rows per grid step: as large as comfortably fits VMEM, multiple of
    # lcm(8, B) so blocks are sublane-aligned AND keep the row -> batch (m % B)
    # correspondence needed by the pre-tiled state@W.T bias.
    unit = (8 * B) // math.gcd(8, B)
    tm_cap = max(unit, (512 // unit) * unit)               # ~512 rows per step
    TM = min(M, tm_cap)
    if TM == M and M >= 2 * unit:
        # Keep >= 2 grid blocks so both v7x TensorCores get work.
        TM = max(unit, (pl.cdiv(M, 2) // unit) * unit)
    grid = (pl.cdiv(M, TM),)

    # One-time weight prep (no per-step in-kernel transposes); bf16 MXU operands.
    win_t = Win.T.astype(jnp.bfloat16)                     # (I, R)
    wout_t = Wout_w.T.astype(jnp.bfloat16)                 # (R, O)
    bias = Wout_b.reshape(1, O).astype(jnp.float32)        # (1, O)
    # Per-row reservoir bias for one block: row m of any block is batch m % B.
    sw_tile = jnp.tile(sw, (TM // B, 1)).astype(jnp.float32)   # (TM, R)

    flops = 2 * M * (I * R + R * O)
    transcendentals = M * (R + O)
    bytes_accessed = (M * I * 4 + TM * R * 4 + I * R * 2 + R * O * 2 + O * 4
                      + M * O * 4)

    out2 = pl.pallas_call(
        esn_kernel,
        out_shape=jax.ShapeDtypeStruct((M, O), jnp.float32),
        grid=grid,
        in_specs=[
            pl.BlockSpec((TM, I), lambda m: (m, 0)),       # x rows for this step
            # Grid-invariant blocks (constant index_map): DMA'd only once.
            # TODO(synk): for reservoir sizes in the thousands, add
            # pipeline_mode=pl.Buffered(1) to these specs to drop their second
            # (unused) VMEM buffer; not needed at these sizes.
            pl.BlockSpec((TM, R), lambda m: (0, 0)),       # state @ W.T tile
            pl.BlockSpec((I, R), lambda m: (0, 0)),        # Win^T
            pl.BlockSpec((R, O), lambda m: (0, 0)),        # Wout^T
            pl.BlockSpec((1, O), lambda m: (0, 0)),        # bias
        ],
        out_specs=pl.BlockSpec((TM, O), lambda m: (m, 0)),
        compiler_params=pltpu.CompilerParams(
            dimension_semantics=("parallel",),
            vmem_limit_bytes=32 * 1024 * 1024,
        ),
        cost_estimate=pl.CostEstimate(
            flops=flops,
            transcendentals=transcendentals,
            bytes_accessed=bytes_accessed,
        ),
    )(x2, sw_tile, win_t, wout_t, bias)

    return out2.reshape(T, B, O)


if __name__ == "__main__":
    T, B = 8, 4
    input_size, reservoir_size, output_size = 16, 32, 8
    spectral_radius = 0.9

    key = jax.random.PRNGKey(0)
    kx, ks, kwin, kw, kwo, kb = jax.random.split(key, 6)

    x = jax.random.normal(kx, (T, B, input_size), dtype=jnp.float32)
    state0 = 0.1 * jax.random.normal(ks, (B, reservoir_size), dtype=jnp.float32)

    # Parameter init mirroring the PyTorch __init__.
    Win = jax.random.normal(kwin, (reservoir_size, input_size), dtype=jnp.float32)
    W = jax.random.normal(kw, (reservoir_size, reservoir_size), dtype=jnp.float32)
    # Spectral-radius rescale: init-time only, nonsymmetric eigvals on host numpy.
    eig = np.linalg.eigvals(np.asarray(W))
    W = W * np.float32(spectral_radius / np.max(np.abs(eig)))
    # nn.Linear(reservoir, output) default init: U(-1/sqrt(R), 1/sqrt(R)).
    lim = 1.0 / np.sqrt(reservoir_size)
    Wout_w = jax.random.uniform(
        kwo, (output_size, reservoir_size), minval=-lim, maxval=lim, dtype=jnp.float32
    )
    Wout_b = jax.random.uniform(
        kb, (output_size,), minval=-lim, maxval=lim, dtype=jnp.float32
    )

    # Run with an explicit (nonzero) initial state so the W path is exercised.
    out = jax.block_until_ready(esn_forward(x, Win, W, Wout_w, Wout_b, state0))
    assert out.shape == (T, B, output_size)

    # Reference 1: exact f32 module semantics (loose tol: kernel feeds bf16 to MXU).
    sw_ref = state0 @ W.T
    h32 = jnp.tanh(x @ Win.T + sw_ref)
    y32 = jnp.tanh(h32 @ Wout_w.T + Wout_b)
    np.testing.assert_allclose(np.asarray(out), np.asarray(y32), rtol=1e-1, atol=1e-1)

    # Reference 2: same math with matching bf16-operand / f32-accumulate dots (tight tol).
    xb = x.astype(jnp.bfloat16)
    h16 = jnp.tanh(
        jnp.matmul(xb, Win.T.astype(jnp.bfloat16), preferred_element_type=jnp.float32)
        + sw_ref
    )
    y16 = jnp.tanh(
        jnp.matmul(h16.astype(jnp.bfloat16), Wout_w.T.astype(jnp.bfloat16),
                   preferred_element_type=jnp.float32)
        + Wout_b
    )
    np.testing.assert_allclose(np.asarray(out), np.asarray(y16), rtol=3e-3, atol=3e-3)

    # Default path (initial_state=None -> zeros), mirroring the PyTorch default.
    out0 = jax.block_until_ready(esn_forward(x, Win, W, Wout_w, Wout_b))
    assert out0.shape == (T, B, output_size)

    print("KERNEL_OK")
</pallas_src>

<mosaic_0001>
module attributes {stable_mosaic.version = 11 : i64} {
  func.func @esn_kernel(%arg0: i32, %arg1: memref<16x16xf32, #tpu.memory_space<vmem>>, %arg2: memref<16x32xf32, #tpu.memory_space<vmem>>, %arg3: memref<16x32xbf16, #tpu.memory_space<vmem>>, %arg4: memref<32x8xbf16, #tpu.memory_space<vmem>>, %arg5: memref<1x8xf32, #tpu.memory_space<vmem>>, %arg6: memref<16x8xf32, #tpu.memory_space<vmem>>) attributes {dimension_semantics = [#tpu.dimension_semantics<parallel>], iteration_bounds = array<i64: 2>, scalar_prefetch = 0 : i64, scratch_operands = 0 : i64, tpu.core_type = #tpu.core_type<tc>, window_params = [{transform_indices = @transform_0, window_bounds = array<i64: 16, 16>}, {pipeline_mode = #tpu.pipeline_mode<synchronous>, transform_indices = @transform_1, window_bounds = array<i64: 16, 32>}, {pipeline_mode = #tpu.pipeline_mode<synchronous>, transform_indices = @transform_2, window_bounds = array<i64: 16, 32>}, {pipeline_mode = #tpu.pipeline_mode<synchronous>, transform_indices = @transform_3, window_bounds = array<i64: 32, 8>}, {pipeline_mode = #tpu.pipeline_mode<synchronous>, transform_indices = @transform_4, window_bounds = array<i64: 1, 8>}, {transform_indices = @transform_5, window_bounds = array<i64: 16, 8>}]} {
    %c0 = arith.constant 0 : index
    %c0_0 = arith.constant 0 : index
    %0 = vector.load %arg1[%c0, %c0_0] : memref<16x16xf32, #tpu.memory_space<vmem>>, vector<16x16xf32>
    %1 = arith.truncf %0 : vector<16x16xf32> to vector<16x16xbf16>
    %c0_1 = arith.constant 0 : index
    %c0_2 = arith.constant 0 : index
    %2 = vector.load %arg3[%c0_1, %c0_2] : memref<16x32xbf16, #tpu.memory_space<vmem>>, vector<16x32xbf16>
    %cst = arith.constant dense<0.000000e+00> : vector<16x32xf32>
    %3 = tpu.matmul %1, %2, %cst {dimension_numbers = #tpu.dot_dimension_numbers<[1], [0], [0], [1], [0, 0, 1, 1], [], []>} : vector<16x16xbf16>, vector<16x32xbf16>, vector<16x32xf32> -> vector<16x32xf32>
    %c0_3 = arith.constant 0 : index
    %c0_4 = arith.constant 0 : index
    %4 = vector.load %arg2[%c0_3, %c0_4] : memref<16x32xf32, #tpu.memory_space<vmem>>, vector<16x32xf32>
    %5 = arith.addf %3, %4 : vector<16x32xf32>
    %6 = math.tanh %5 : vector<16x32xf32>
    %7 = arith.truncf %6 : vector<16x32xf32> to vector<16x32xbf16>
    %c0_5 = arith.constant 0 : index
    %c0_6 = arith.constant 0 : index
    %8 = vector.load %arg4[%c0_5, %c0_6] : memref<32x8xbf16, #tpu.memory_space<vmem>>, vector<32x8xbf16>
    %cst_7 = arith.constant dense<0.000000e+00> : vector<16x8xf32>
    %9 = tpu.matmul %7, %8, %cst_7 {dimension_numbers = #tpu.dot_dimension_numbers<[1], [0], [0], [1], [0, 0, 1, 1], [], []>} : vector<16x32xbf16>, vector<32x8xbf16>, vector<16x8xf32> -> vector<16x8xf32>
    %c0_8 = arith.constant 0 : index
    %c0_9 = arith.constant 0 : index
    %10 = vector.load %arg5[%c0_8, %c0_9] : memref<1x8xf32, #tpu.memory_space<vmem>>, vector<1x8xf32>
    %11 = vector.broadcast %10 : vector<1x8xf32> to vector<16x8xf32>
    %12 = arith.addf %9, %11 : vector<16x8xf32>
    %13 = math.tanh %12 : vector<16x8xf32>
    %c0_10 = arith.constant 0 : index
    %c0_11 = arith.constant 0 : index
    %14 = vector.load %arg6[%c0_10, %c0_11] : memref<16x8xf32, #tpu.memory_space<vmem>>, vector<16x8xf32>
    tpu.vector_store %arg6[%c0_10, %c0_11], %13 {strides = array<i32>} : memref<16x8xf32, #tpu.memory_space<vmem>>, vector<16x8xf32>,
    return
  }
  func.func @transform_0(%arg0: i32) -> (i32, i32) {
    %c0_i32 = arith.constant 0 : i32
    %c0_i32_0 = arith.constant 0 : i32
    return %arg0, %c0_i32 : i32, i32
  }
  func.func @transform_1(%arg0: i32) -> (i32, i32) {
    %c0_i32 = arith.constant 0 : i32
    %c0_i32_0 = arith.constant 0 : i32
    %c0_i32_1 = arith.constant 0 : i32
    return %c0_i32, %c0_i32_0 : i32, i32
  }
  func.func @transform_2(%arg0: i32) -> (i32, i32) {
    %c0_i32 = arith.constant 0 : i32
    %c0_i32_0 = arith.constant 0 : i32
    %c0_i32_1 = arith.constant 0 : i32
    return %c0_i32, %c0_i32_0 : i32, i32
  }
  func.func @transform_3(%arg0: i32) -> (i32, i32) {
    %c0_i32 = arith.constant 0 : i32
    %c0_i32_0 = arith.constant 0 : i32
    %c0_i32_1 = arith.constant 0 : i32
    return %c0_i32, %c0_i32_0 : i32, i32
  }
  func.func @transform_4(%arg0: i32) -> (i32, i32) {
    %c0_i32 = arith.constant 0 : i32
    %c0_i32_0 = arith.constant 0 : i32
    %c0_i32_1 = arith.constant 0 : i32
    return %c0_i32, %c0_i32_0 : i32, i32
  }
  func.func @transform_5(%arg0: i32) -> (i32, i32) {
    %c0_i32 = arith.constant 0 : i32
    %c0_i32_0 = arith.constant 0 : i32
    return %arg0, %c0_i32 : i32, i32
  }
}

</mosaic_0001>

<bundles_post_ra>
// kernel: esn_forward.1
= control target key start
LH: loop header
LB: loop body
LE: loop exit
PB: predicated region body
PF: predicated region fallthrough
CT: control target
= control target key end

     0   :  { %10 = vsyncpa [#allocation3], 0  ;;  %s745_s0 = inlined_call_operand.vmem [shape: f32[32,16], index: 0, kind: input, shape index: {}]   ;;  %s746_s1 = inlined_call_operand.vmem [shape: f32[16,32], index: 1, kind: input, shape index: {}]   ;;  %s747_s2 = inlined_call_operand.vmem [shape: bf16[16,32], index: 2, kind: input, shape index: {}]   ;;  %s748_s3 = inlined_call_operand.vmem [shape: bf16[32,8], index: 3, kind: input, shape index: {}]   ;;  %s749_s4 = inlined_call_operand.vmem [shape: f32[1,8], index: 4, kind: input, shape index: {}]   ;;  %s750_s5 = inlined_call_operand.hbm [shape: f32[32,8], index: 5, kind: output, shape index: {}]  }
   0x1   :  { %12 = vsyncpa [#allocation3 + $0x1], 0  ;;  %s626_s18 = smov 0   ;;  %s628_s19 = smov 0  }
   0x2   :  { %s630_s20 = smov 0   ;;  %s632_s21 = smov 0  }
   0x3 LB: > { %s647_s22 = sadd.s32 4294967295, %s589_s21   ;;  %s437_s23 = sadd.s32 4294967294, %s589_s21   ;;  %s589_s21 = sphi %s632_s21, %s756_s21   ;;  %s585_s20 = sphi %s630_s20, %s755_s20   ;;  %s581_s19 = sphi %s628_s19, %s754_s19   ;;  %s577_s18 = sphi %s626_s18, %s753_s18  }
   0x4   : > { %s651_s24 = sadd.s32 1, %s589_s21   ;;  %s135_s25 = sadd.s32 1, %s585_s20 }
   0x5   : > { %s132_s26 = ssub.s32 %s589_s21, %s651_s24  ;;  %p145_p0 = scmp.ne.s32.totalorder %s585_s20, %s581_s19 }
   0x6   : > { %p133_p1 = scmp.eq.s32.totalorder %s132_s26, 0  ;;  %p146_p2 = scmp.eq.s32.totalorder %s647_s22, 1 }
   0x7   : > { %p151_p3 = scmp.ne.s32.totalorder %s581_s19, %s577_s18  ;;  %p152_p4 = scmp.eq.s32.totalorder %s437_s23, 1 }
   0x8   : > { %s662_s27 = scalar_select %p133_p1, %s585_s20, %s135_s25  }
   0x9   : > { %p664_p5 = por %p146_p2, %p145_p0  ;;  %p668_p6 = por %p152_p4, %p151_p3 }
   0xa   : > { %p440_p7 = scmp.ge.s32.totalorder %s589_s21, 1  ;;  %p191_p8 = scmp.lt.s32.totalorder %s589_s21, 3 }
   0xc   : > { %p192_p9 = pnand %p440_p7, %p191_p8 }
   0xd   : > { %s442_s7 = sshll.u32 (!%p192_p9), %s647_s22, 1  ;;  %s216_s6 = sand.u32 (!%p192_p9), 1, %s581_s19  }
   0xe   : > { %195 = sbr.rel (%p192_p9) target bundleno = 467 (0x1d3), region = 40  ;;  %p220_p10 = scmp.lt.s32.totalorder (!%p192_p9), %s442_s7, 3 }
   0xf   : > { %s705_s14 = scalar_lea.sflag (!%p192_p9), [#allocation3], %s216_s6 }
  0x13   : > { %v518_v0 = vld [vmem:[%s747_s2] sm:$0xff]   ;;  %v591_v1 = vmov 0.0   ;;  %vm592_vm0 = vmmov 0   ;;  %s758_s7 = smov (!%p220_p10, %s442_s7), 3  ;;  %vm240_vm1 = vcmask 130048   ;;  %v519_v5 = vld [vmem:[%s748_s3 + $0x8] sm:$0xff]  }
  0x14   : > { %461 = vmatprep.subr.bf16.mxu0 %v591_v1  ;;  %467 = vmatprep.subr.bf16.mxu1 %v591_v1  ;;  %s443_s8 = sshll.u32 %s758_s7, 3  ;;  %v520_v6 = vld [vmem:[%s748_s3] sm:$0xff]   ;;  %v233_v11 = vld [vmem:[%s746_s1 + $0x8] sm:$0xff]  ;;  %vm311_vm2 = vcmask 261120   ;;  %s441_s7 = sshll.u32 %s216_s6, 4  ;;  %vm358_vm3 = vcmask 64512  }
  0x15   : > { %462 = vmatpush3.bf16.msra.mxu0 %v518_v0  ;;  %463 = vmatprep.mubr.msk.bf16.mxu0 %vm592_vm0, %v591_v1  ;;  %s223_s11 = scalar_lea.vmem %s745_s0, %s443_s8  ;;  %v232_v7 = vld [vmem:[%s746_s1] sm:$0xff]  ;;  %s455_s8 = sshll.u32 %s647_s22, 8 }
  0x16   : > { %471 = vmatprep.mubr.msk.bf16.mxu1 %vm592_vm0, %v591_v1  ;;  %v227_v2 = vld [vmem:[%s223_s11] sm:$0xff]  ;;  %v228_v3 = vld [vmem:[%s223_s11 + $0x8] sm:$0xff]  ;;  %468 = vmatpush3.bf16.msra.mxu1 %v519_v5  ;;  %s218_s9 = scalar_lea.vmem [#allocation2], %s441_s7  ;;  %s701_s13 = scalar_lea.hbm %s750_s5, %s455_s8 }
  0x17   : > { %v229_v4 = vpack.c.bf16 %v228_v3, %v227_v2  ;;  %469 = vmatprep.subr.bf16.mxu1 %v591_v1  ;;  %v446_v18 = vld [vmem:[%s749_s4] ss:$0 sm:$0xff]  ;;  %s375_s10 = sshll.u32 %s218_s9, 4  ;;  %s593_s22 = smov [#allocation2]   ;;  %s703_s10 = int_to_ptr.vmem [resolvable:$true] %s375_s10 }
  0x18   : > { %s529_s15 = scalar_lea.vmem %s703_s10, 256  ;;  %s533_s16 = sshll.u32 %s593_s22, 4  ;;  %s534_s16 = int_to_ptr.vmem [resolvable:$false] %s533_s16 }
  0x19   : > { %464 = vmatmul.mubr.msk.bf16.vlgmr.msra.gmra.mxu0 %vm240_vm1, %v229_v4  ;;  %p530_p11 = scmp.ne.s32.totalorder %s703_s10, %s529_s15  ;;  %s535_s17 = scalar_lea.vmem %s534_s16, 512 }
  0x1a   : > { %470 = vmatpush3.bf16.msra.mxu1 %v520_v6  ;;  %p536_p0 = scmp.lt.s32.totalorder %s703_s10, %s534_s16  ;;  %p537_p1 = scmp.lt.s32.totalorder %s535_s17, %s529_s15 }
  0x1b   : > { %p531_p12 = pnand %p530_p11, %p664_p5 }
  0x1c   : > { %p538_p2 = por %p537_p1, %p536_p0 }
  0x1d   : > { %p532_p13 = pneg %p531_p12 }
  0x1f   : > { %p539_p3 = pnand %p538_p2, %p532_p13 }
  0xd9   : > { %v278_v8 = vpop.f32.mrf.mxu0 }
  0xda   : > { %v279_v9 = vadd.f32 %v278_v8, %v232_v7 }
  0xdb   : > { %v465_v10 = vpop.f32.mrf.mxu0 }
  0xdc   : > { %521 = vtanh.f32 %v279_v9 }
  0xdd   : > { %v281_v12 = vpop.f32.mrf.mxu0 }
  0xde   : > { %v282_v13 = vadd.f32 %v281_v12, %v233_v11 }
  0xdf   : > { %v466_v14 = vpop.f32.mrf.mxu0 }
  0xe0   : > { %523 = vtanh.f32 %v282_v13 }
  0xe9   : > { %v522_v15 = vpop.eup %521 }
  0xed   : > { %v524_v16 = vpop.eup %523 }
  0xee   : > { %v287_v17 = vpack.c.bf16 %v524_v16, %v522_v15 }
  0xf0   : > { %472 = vmatmul.mubr.msk.bf16.vlgmr.msra.gmra.mxu1 %vm311_vm2, %v287_v17 }
 0x1b0   : > { %v349_v19 = vpop.f32.mrf.mxu1 }
 0x1b1   : > { %v350_v20 = vadd.f32 %v446_v18, %v349_v19 }
 0x1b2   : > { %v473_v21 = vpop.f32.mrf.mxu1 }
 0x1b3   : > { %525 = vtanh.f32 %v350_v20 }
 0x1b4   : > { %v352_v22 = vpop.f32.mrf.mxu1 }
 0x1b5   : > { %v353_v23 = vadd.f32 %v446_v18, %v352_v22 }
 0x1b6   : > { %v474_v24 = vpop.f32.mrf.mxu1 }
 0x1b7   : > { %527 = vtanh.f32 %v353_v23 }
 0x1c0   : > { %v526_v25 = vpop.eup %525 }
 0x1c1   : > { %359 = vst.msk [vmem:[%s218_s9] sm:$0xff] %vm358_vm3, %v526_v25 }
 0x1c4   : > { %v528_v26 = vpop.eup %527 }
 0x1c5   : > { %360 = vst.msk [vmem:[%s218_s9 + $0x8] sm:$0xff] %vm358_vm3, %v528_v26 }
 0x1c6   : > { %542 = shalt.err (!%p539_p3)
}
 0x1c7   : > { %s543_s23 = scalar_lea.hbm %s701_s13, 256  ;;  %s547_s30 = scalar_lea.hbm %s750_s5, 512 }
 0x1c8   : > { %p544_p4 = scmp.ne.s32.totalorder %s701_s13, %s543_s23  ;;  %p548_p9 = scmp.lt.s32.totalorder %s701_s13, %s750_s5 }
 0x1c9   : > { %p549_p10 = scmp.lt.s32.totalorder %s547_s30, %s543_s23 }
 0x1ca   : > { %p545_p7 = pnand %p544_p4, %p664_p5 }
 0x1cb   : > { %p550_p11 = por %p549_p10, %p548_p9 }
 0x1cc   : > { %p546_p8 = pneg %p545_p7 }
 0x1ce   : > { %p551_p12 = pnand %p550_p11, %p546_p8 }
 0x1d0   : > { %554 = shalt.err (!%p551_p12)
}
 0x1d1   : > { %s594_s8 = smov 128   ;;  %s595_s9 = smov 8  }
 0x1d2   : > { %475 = dma.vmem_to_hbm [thread:$0]  (%p664_p5), %s703_s10, 256, %s701_s13, %s705_s14, %s594_s8, %s594_s8, %s595_s9  }
 0x1d3 PF: > { %p481_p13 = scmp.ge.s32.totalorder %s589_s21, 2  ;;  %s390_s11 = sand.u32 1, %s577_s18  }
 0x1d4   : > { %s391_s12 = scalar_lea.sflag [#allocation3], %s390_s11 }
 0x1d5   : > { %p478_p0 = pnand %p481_p13, %p668_p6 }
 0x1d7   : > { %p479_p1 = pneg %p478_p0 }
 0x1d9   : > { %572 = dma.done.wait (%p479_p1), %s391_s12, 256  }
 0x1da   : > { %574 = vsyncadd (%p479_p1), %s391_s12, 4294967040  ;;  %p15_p2 = scmp.ge.s32.totalorder %s651_s24, 4   ;;  %s753_s18 = smov %s581_s19 }
 0x1db   : > { %s754_s19 = smov %s585_s20  ;;  %s755_s20 = smov %s662_s27 }
 0x1dc   : > { %s756_s21 = smov %s651_s24  ;;  %17 = sbr.rel (!%p15_p2) target bundleno = 3 (0x3), region = 75 }
 0x1e1   :  { %396 = vsyncpa [#allocation3], 1 }
 0x1e2   :  { %398 = vsyncpa [#allocation3 + $0x1], 1 }

</bundles_post_ra>
